<compile_context>
chip_gen: v5e
topology: v5e:2x2
jax: 0.10.0
libtpu: 0.0.40
codegen_flags: <defaults>
</compile_context>

<pallas_src>
import numpy as np
import jax
import jax.numpy as jnp
from jax import lax
from jax.experimental import pallas as pl
from jax.experimental.pallas import tpu as pltpu

MAX_EDGE_LENGTH = 2.0
MAX_DIMENSION = 1  # forward() only consumes H0 generators (idx[0]) -> edges only
_DP = 128          # lane-dense padding of the feature dimension


# --------------------------------------------------------------------------
# Pallas kernel: tiled all-pairs Euclidean distances, d[i,j] = ||x_i - x_j||
# --------------------------------------------------------------------------
def _dist_tile_kernel(xr_ref, xc_ref, out_ref):
    xr = xr_ref[...]                                          # (tm, 128) f32
    xc = xc_ref[...]                                          # (tn, 128) f32
    sq_r = jnp.sum(xr * xr, axis=-1, keepdims=True)           # (tm, 1)
    sq_c = jnp.sum(xc * xc, axis=-1, keepdims=True)           # (tn, 1)
    # xr @ xc.T on the MXU, contracting the lane-dense feature dim.
    gram = lax.dot_general(
        xr, xc, (((1,), (1,)), ((), ())),
        preferred_element_type=jnp.float32)                   # (tm, tn)
    d2 = sq_r + sq_c.T - 2.0 * gram
    # sqrt on the EUP is essentially free in this store-bound kernel.
    out_ref[...] = jnp.sqrt(jnp.maximum(d2, 0.0))


def _choose_tile(n):
    # Mem-bound sweet spot on v5e/v6e is 512-1024; 512x512 f32 tiles
    # (double-buffered ~3 MiB total) also fit v7x's 64 MiB VMEM with ease.
    for t in (512, 256, 128):
        if n >= t:
            return t
    return 128


def pairwise_dist(points):
    """points: (N, D) f32 -> (N, N) f32 Euclidean distance matrix (device)."""
    n, d = points.shape
    tile = _choose_tile(n)
    n_pad = pl.cdiv(n, tile) * tile
    # Pad feature dim to 128 lanes (MXU wants a lane-dense contraction) and
    # pad N up to a tile multiple so output stores are full-width.
    x_pad = jnp.zeros((n_pad, _DP), dtype=jnp.float32).at[:n, :d].set(points)

    grid = (n_pad // tile, n_pad // tile)
    dist = pl.pallas_call(
        _dist_tile_kernel,
        out_shape=jax.ShapeDtypeStruct((n_pad, n_pad), jnp.float32),
        grid=grid,
        in_specs=[
            pl.BlockSpec((tile, _DP), lambda i, j: (i, 0)),   # row tile, reused over j
            pl.BlockSpec((tile, _DP), lambda i, j: (j, 0)),   # col tile
        ],
        out_specs=pl.BlockSpec((tile, tile), lambda i, j: (i, j)),
        compiler_params=pltpu.CompilerParams(
            dimension_semantics=("parallel", "parallel"),
            vmem_limit_bytes=32 * 1024 * 1024,
        ),
    )(x_pad, x_pad)
    return dist[:n, :n]


# --------------------------------------------------------------------------
# Host glue: H0 flag persistence generators == thresholded-MST edges
# --------------------------------------------------------------------------
# TODO(synk): gudhi's RipsComplex / simplex tree / compute_persistence /
# flag_persistence_generators is combinatorial union-find pairing with no
# Pallas equivalent; replaced by a host-side thresholded Kruskal MST, which
# yields the same H0 generator edge set (tie-breaking/order may differ).
def _h0_generator_edges(d_np, max_edge_length):
    d = np.asarray(d_np, dtype=np.float64)
    n = d.shape[0]
    iu, ju = np.triu_indices(n, k=1)
    w = d[iu, ju]
    keep = w <= max_edge_length
    iu, ju, w = iu[keep], ju[keep], w[keep]
    order = np.argsort(w, kind="stable")
    iu, ju = iu[order].tolist(), ju[order].tolist()

    parent = list(range(n))

    def find(a):
        while parent[a] != a:
            parent[a] = parent[parent[a]]
            a = parent[a]
        return a

    verts = []
    for i, j in zip(iu, ju):
        ri, rj = find(i), find(j)
        if ri != rj:
            parent[ri] = rj
            verts.append((i, j))
    return np.asarray(verts, dtype=np.int32).reshape(-1, 2)


# --------------------------------------------------------------------------
# Module forward
# --------------------------------------------------------------------------
def rips_forward(points, max_edge_length=MAX_EDGE_LENGTH, max_dimension=MAX_DIMENSION):
    points = jnp.asarray(points, dtype=jnp.float32)           # (N, D)

    # 1) pairwise distances (Pallas, tiled, MXU + EUP sqrt)
    d = pairwise_dist(points)                                 # (N, N) on device

    # 2) H0 persistence generators (host, combinatorial)
    verts = _h0_generator_edges(jax.device_get(d), float(max_edge_length))
    if verts.shape[0] == 0:
        return jnp.zeros((0,), dtype=jnp.float32)

    # 3) dgm[e] = || x[v0] - x[v1] || == d[v0, v1]  (tiny device gather;
    #    reuses the matrix already computed instead of an E*N one-hot matmul)
    v0 = jnp.asarray(verts[:, 0], dtype=jnp.int32)
    v1 = jnp.asarray(verts[:, 1], dtype=jnp.int32)
    return d[v0, v1]


if __name__ == "__main__":
    key = jax.random.PRNGKey(0)
    N, D = 16, 3                                              # small point cloud in R^3
    points = jax.random.normal(key, (N, D), dtype=jnp.float32)

    dgm = rips_forward(points, MAX_EDGE_LENGTH, MAX_DIMENSION)
    jax.block_until_ready(dgm)

    # sanity check against a plain-JAX reference of the tensor hot path
    diff = points[:, None, :] - points[None, :, :]
    d_ref = jnp.sqrt(jnp.maximum(jnp.sum(diff * diff, axis=-1), 0.0))
    verts_ref = _h0_generator_edges(jax.device_get(d_ref), MAX_EDGE_LENGTH)
    if verts_ref.shape[0] > 0:
        ref = jnp.linalg.norm(
            points[verts_ref[:, 0]] - points[verts_ref[:, 1]], axis=-1)
        np.testing.assert_allclose(
            np.asarray(dgm), np.asarray(ref), rtol=1e-4, atol=1e-4)
        assert dgm.shape == ref.shape

    print("KERNEL_OK")
</pallas_src>

<mosaic_0001>
module attributes {stable_mosaic.version = 11 : i64} {
  func.func @_dist_tile_kernel(%arg0: i32, %arg1: i32, %arg2: memref<128x128xf32, #tpu.memory_space<vmem>>, %arg3: memref<128x128xf32, #tpu.memory_space<vmem>>, %arg4: memref<128x128xf32, #tpu.memory_space<vmem>>) attributes {dimension_semantics = [#tpu.dimension_semantics<parallel>, #tpu.dimension_semantics<parallel>], iteration_bounds = array<i64: 1, 1>, scalar_prefetch = 0 : i64, scratch_operands = 0 : i64, tpu.core_type = #tpu.core_type<tc>, window_params = [{transform_indices = @transform_0, window_bounds = array<i64: 128, 128>}, {transform_indices = @transform_1, window_bounds = array<i64: 128, 128>}, {transform_indices = @transform_2, window_bounds = array<i64: 128, 128>}]} {
    %c0 = arith.constant 0 : index
    %c0_0 = arith.constant 0 : index
    %0 = vector.load %arg2[%c0, %c0_0] : memref<128x128xf32, #tpu.memory_space<vmem>>, vector<128x128xf32>
    %c0_1 = arith.constant 0 : index
    %c0_2 = arith.constant 0 : index
    %1 = vector.load %arg3[%c0_1, %c0_2] : memref<128x128xf32, #tpu.memory_space<vmem>>, vector<128x128xf32>
    %2 = arith.mulf %0, %0 : vector<128x128xf32>
    %cst = arith.constant dense<0.000000e+00> : vector<128xf32>
    %3 = vector.multi_reduction <add>, %2, %cst [1] : vector<128x128xf32> to vector<128xf32>
    %4 = vector.shape_cast %3 : vector<128xf32> to vector<128x1xf32>
    %5 = arith.mulf %1, %1 : vector<128x128xf32>
    %cst_3 = arith.constant dense<0.000000e+00> : vector<128xf32>
    %6 = vector.multi_reduction <add>, %5, %cst_3 [1] : vector<128x128xf32> to vector<128xf32>
    %7 = vector.shape_cast %6 : vector<128xf32> to vector<128x1xf32>
    %cst_4 = arith.constant dense<0.000000e+00> : vector<128x128xf32>
    %8 = tpu.matmul %0, %1, %cst_4 {dimension_numbers = #tpu.dot_dimension_numbers<[1], [1], [0], [0], [0, 0, 1, 0], [], []>} : vector<128x128xf32>, vector<128x128xf32>, vector<128x128xf32> -> vector<128x128xf32>
    %9 = tpu.transpose %7, [1, 0] : vector<128x1xf32> -> vector<1x128xf32>
    %10 = vector.broadcast %4 : vector<128x1xf32> to vector<128x128xf32>
    %11 = vector.broadcast %9 : vector<1x128xf32> to vector<128x128xf32>
    %12 = arith.addf %10, %11 : vector<128x128xf32>
    %cst_5 = arith.constant 2.000000e+00 : f32
    %13 = vector.broadcast %cst_5 : f32 to vector<128x128xf32>
    %14 = arith.mulf %13, %8 : vector<128x128xf32>
    %15 = arith.subf %12, %14 : vector<128x128xf32>
    %cst_6 = arith.constant 0.000000e+00 : f32
    %16 = vector.broadcast %cst_6 : f32 to vector<128x128xf32>
    %17 = arith.maximumf %15, %16 : vector<128x128xf32>
    %18 = math.sqrt %17 : vector<128x128xf32>
    %c0_7 = arith.constant 0 : index
    %c0_8 = arith.constant 0 : index
    %19 = vector.load %arg4[%c0_7, %c0_8] : memref<128x128xf32, #tpu.memory_space<vmem>>, vector<128x128xf32>
    tpu.vector_store %arg4[%c0_7, %c0_8], %18 {strides = array<i32>} : memref<128x128xf32, #tpu.memory_space<vmem>>, vector<128x128xf32>,
    return
  }
  func.func @transform_0(%arg0: i32, %arg1: i32) -> (i32, i32) {
    %c0_i32 = arith.constant 0 : i32
    %c0_i32_0 = arith.constant 0 : i32
    return %arg0, %c0_i32 : i32, i32
  }
  func.func @transform_1(%arg0: i32, %arg1: i32) -> (i32, i32) {
    %c0_i32 = arith.constant 0 : i32
    %c0_i32_0 = arith.constant 0 : i32
    return %arg1, %c0_i32 : i32, i32
  }
  func.func @transform_2(%arg0: i32, %arg1: i32) -> (i32, i32) {
    %c0_i32 = arith.constant 0 : i32
    return %arg0, %arg1 : i32, i32
  }
}

</mosaic_0001>

<bundles_post_ra>
// kernel: tpu_custom_call.1
= control target key start
LH: loop header
LB: loop body
LE: loop exit
PB: predicated region body
PF: predicated region fallthrough
CT: control target
= control target key end

     0   :  { %7 = vsyncpa [#allocation3], 0  ;;  %s1172_s0 = inlined_call_operand.hbm [shape: f32[128,128], index: 0, kind: input, shape index: {}]   ;;  %s1173_s1 = inlined_call_operand.hbm [shape: f32[128,128], index: 1, kind: input, shape index: {}]   ;;  %s1174_s2 = inlined_call_operand.hbm [shape: f32[128,128], index: 2, kind: output, shape index: {}]  }
   0x1   :  { %8 = vsyncpa [#allocation6], 0 }
   0x2   :  { %9 = vsyncpa [#allocation4], 0  ;;  %s14_s11 = sshll.u32 %s1172_s0, 4  ;;  %s725_s12 = smov [#allocation2]   ;;  %s15_s11 = int_to_ptr.hbm [resolvable:$true] %s14_s11 }
   0x3   :  { %s16_s13 = sshll.u32 %s725_s12, 4  ;;  %s27_s16 = sshll.u32 %s1173_s1, 4  ;;  %s17_s13 = int_to_ptr.vmem [resolvable:$true] %s16_s13  ;;  %s28_s16 = int_to_ptr.hbm [resolvable:$true] %s27_s16 }
   0x4   :  { %s726_s17 = smov 128   ;;  %s727_s18 = smov 8  }
   0x5   :  { %22 = dma.hbm_to_vmem [thread:$0]  %s15_s11, 2048, %s17_s13, [#allocation3], %s726_s17, %s726_s17, %s727_s18  }
   0x6   :  { %s728_s19 = smov [#allocation5]  }
   0x7   :  { %s29_s20 = sshll.u32 %s728_s19, 4  ;;  %s30_s20 = int_to_ptr.vmem [resolvable:$true] %s29_s20 }
   0x8   :  { %35 = dma.hbm_to_vmem [thread:$0]  %s28_s16, 2048, %s30_s20, [#allocation6], %s726_s17, %s726_s17, %s727_s18  }
   0x9   :  { %719 = dma.done.wait [#allocation3], 2048  }
   0xa   :  { %720 = vsyncadd [#allocation3], 4294965248 }
   0xb   :  { %721 = dma.done.wait [#allocation6], 2048  }
   0xc   :  { %722 = vsyncadd [#allocation6], 4294965248  ;;  %v757_v0 = vld [vmem:[#allocation2 + $0x20] sm:$0xff]  ;;  %v765_v4 = vld [vmem:[#allocation2 + $0x10] sm:$0xff]  ;;  %s729_s0 = smov [#allocation7]   ;;  %s548_s23 = sshll.u32 %s1174_s2, 4  ;;  %s549_s23 = int_to_ptr.hbm [resolvable:$true] %s548_s23 }
   0xd   :  { %v759_v1 = vld [vmem:[#allocation2] sm:$0xff]  ;;  %v80_v2 = vmul.f32 %v757_v0, %v757_v0  ;;  %v78_v5 = vmul.f32 %v765_v4, %v765_v4  ;;  %v769_v6 = vld [vmem:[#allocation2 + $0x28] sm:$0xff]  ;;  %v773_v8 = vld [vmem:[#allocation2 + $0x18] sm:$0xff]  ;;  %s546_s1 = sshll.u32 %s729_s0, 4  ;;  %s547_s1 = int_to_ptr.vmem [resolvable:$true] %s546_s1 }
   0xe   :  { %v76_v3 = vmul.f32 %v759_v1, %v759_v1  ;;  %v771_v7 = vld [vmem:[#allocation2 + $0x8] sm:$0xff]  ;;  %v81_v9 = vmul.f32 %v769_v6, %v769_v6  ;;  %v79_v11 = vmul.f32 %v773_v8, %v773_v8  ;;  %v781_v12 = vld [vmem:[#allocation5] sm:$0xff]  ;;  %v783_v13 = vld [vmem:[#allocation2 + $0x30] sm:$0xff] }
   0xf   :  { %100 = vadd.xlane.f32.xlu2 %v80_v2  ;;  %96 = vadd.xlane.f32.xlu1 %v78_v5  ;;  %v77_v10 = vmul.f32 %v771_v7, %v771_v7  ;;  %v785_v14 = vld [vmem:[#allocation2 + $0x38] sm:$0xff]  ;;  %v124_v15 = vmul.f32 %v781_v12, %v781_v12  ;;  %v82_v16 = vmul.f32 %v783_v13, %v783_v13  ;;  %v795_v19 = vld [vmem:[#allocation5 + $0x8] sm:$0xff]  ;;  %v800_v21 = vld [vmem:[#allocation5 + $0x10] sm:$0xff] }
  0x10   :  { %92 = vadd.xlane.f32.xlu0 %v76_v3  ;;  %v83_v17 = vmul.f32 %v785_v14, %v785_v14  ;;  %v793_v18 = vld [vmem:[#allocation5 + $0x78] sm:$0xff]  ;;  %v803_v22 = vld [vmem:[#allocation5 + $0x70] sm:$0xff]  ;;  %v125_v23 = vmul.f32 %v795_v19, %v795_v19  ;;  %v126_v25 = vmul.f32 %v800_v21, %v800_v21  ;;  %v817_v26 = vld [vmem:[#allocation5 + $0x68] sm:$0xff] }
  0x11   :  { %v797_v20 = vld [vmem:[#allocation5 + $0x18] sm:$0xff]  ;;  %563 = vmatpush.xpose.msra.mxu2 %v793_v18  ;;  %564 = vmatpush.xpose.msra.mxu3 %v793_v18  ;;  %v819_v27 = vld [vmem:[#allocation5 + $0x20] sm:$0xff]  ;;  %v66_v28 = vld [vmem:[#allocation5 + $0x30] sm:$0xff]  ;;  %v139_v45 = vmul.f32 %v793_v18, %v793_v18  ;;  %v137_v50 = vmul.f32 %v817_v26, %v817_v26  ;;  %v138_v51 = vmul.f32 %v803_v22, %v803_v22 }
  0x12   :  { %172 = vmatpush.xpose.msra.mxu0 %v793_v18  ;;  %562 = vmatpush.xpose.msra.mxu1 %v793_v18  ;;  %v127_v24 = vmul.f32 %v797_v20, %v797_v20  ;;  %v65_v29 = vld [vmem:[#allocation5 + $0x28] sm:$0xff]  ;;  %v128_v30 = vmul.f32 %v819_v27, %v819_v27  ;;  %v130_v31 = vmul.f32 %v66_v28, %v66_v28  ;;  %v72_v32 = vld [vmem:[#allocation5 + $0x60] sm:$0xff]  ;;  %v71_v34 = vld [vmem:[#allocation5 + $0x58] sm:$0xff] }
  0x13   :  { %v129_v33 = vmul.f32 %v65_v29, %v65_v29  ;;  %v69_v35 = vld [vmem:[#allocation5 + $0x48] sm:$0xff]  ;;  %v67_v36 = vld [vmem:[#allocation5 + $0x38] sm:$0xff]  ;;  %v68_v37 = vld [vmem:[#allocation5 + $0x40] sm:$0xff]  ;;  %v136_v42 = vmul.f32 %v72_v32, %v72_v32  ;;  %v135_v44 = vmul.f32 %v71_v34, %v71_v34 }
  0x14   :  { %v70_v38 = vld [vmem:[#allocation5 + $0x50] sm:$0xff]  ;;  %v133_v39 = vmul.f32 %v69_v35, %v69_v35  ;;  %v131_v40 = vmul.f32 %v67_v36, %v67_v36  ;;  %v132_v41 = vmul.f32 %v68_v37, %v68_v37  ;;  %v57_v48 = vld [vmem:[#allocation2 + $0x68] sm:$0xff]  ;;  %v52_v52 = vld [vmem:[#allocation2 + $0x40] sm:$0xff] }
  0x15   :  { %566 = vmatpush.xpose.msra.mxu2 %v803_v22  ;;  %567 = vmatpush.xpose.msra.mxu3 %v803_v22  ;;  %v134_v43 = vmul.f32 %v70_v38, %v70_v38  ;;  %v54_v46 = vld [vmem:[#allocation2 + $0x50] sm:$0xff]  ;;  %v89_v49 = vmul.f32 %v57_v48, %v57_v48  ;;  %v56_v53 = vld [vmem:[#allocation2 + $0x60] sm:$0xff]  ;;  %v53_v54 = vld [vmem:[#allocation2 + $0x48] sm:$0xff]  ;;  %v84_v60 = vmul.f32 %v52_v52, %v52_v52 }
  0x16   :  { %173 = vmatpush.xpose.msra.mxu0 %v803_v22  ;;  %565 = vmatpush.xpose.msra.mxu1 %v803_v22  ;;  %v86_v47 = vmul.f32 %v54_v46, %v54_v46  ;;  %v58_v55 = vld [vmem:[#allocation2 + $0x70] sm:$0xff]  ;;  %v85_v59 = vmul.f32 %v53_v54, %v53_v54  ;;  %v55_v61 = vld [vmem:[#allocation2 + $0x58] sm:$0xff] }
  0x17   :  { %102 = vadd.xlane.f32.xlu2 %v81_v9  ;;  %98 = vadd.xlane.f32.xlu1 %v79_v11  ;;  %v59_v62 = vld [vmem:[#allocation2 + $0x78] sm:$0xff]  ;;  %v87_v2 = vmul.f32 %v55_v61, %v55_v61 }
  0x18   :  { %94 = vadd.xlane.f32.xlu0 %v77_v10 }
  0x19   :  { %569 = vmatpush.xpose.msra.mxu2 %v817_v26  ;;  %570 = vmatpush.xpose.msra.mxu3 %v817_v26 }
  0x1a   :  { %174 = vmatpush.xpose.msra.mxu0 %v817_v26  ;;  %568 = vmatpush.xpose.msra.mxu1 %v817_v26 }
  0x1d   :  { %572 = vmatpush.xpose.msra.mxu2 %v72_v32  ;;  %573 = vmatpush.xpose.msra.mxu3 %v72_v32 }
  0x1e   :  { %175 = vmatpush.xpose.msra.mxu0 %v72_v32  ;;  %571 = vmatpush.xpose.msra.mxu1 %v72_v32 }
  0x1f   :  { %140 = vadd.xlane.f32.xlu2 %v124_v15  ;;  %106 = vadd.xlane.f32.xlu1 %v83_v17 }
  0x20   :  { %104 = vadd.xlane.f32.xlu0 %v82_v16 }
  0x21   :  { %575 = vmatpush.xpose.msra.mxu2 %v71_v34  ;;  %576 = vmatpush.xpose.msra.mxu3 %v71_v34 }
  0x22   :  { %176 = vmatpush.xpose.msra.mxu0 %v71_v34  ;;  %574 = vmatpush.xpose.msra.mxu1 %v71_v34 }
  0x25   :  { %578 = vmatpush.xpose.msra.mxu2 %v70_v38  ;;  %579 = vmatpush.xpose.msra.mxu3 %v70_v38 }
  0x26   :  { %177 = vmatpush.xpose.msra.mxu0 %v70_v38  ;;  %577 = vmatpush.xpose.msra.mxu1 %v70_v38 }
  0x27   :  { %146 = vadd.xlane.f32.xlu2 %v127_v24  ;;  %144 = vadd.xlane.f32.xlu1 %v126_v25 }
  0x28   :  { %142 = vadd.xlane.f32.xlu0 %v125_v23 }
  0x29   :  { %581 = vmatpush.xpose.msra.mxu2 %v69_v35  ;;  %582 = vmatpush.xpose.msra.mxu3 %v69_v35 }
  0x2a   :  { %178 = vmatpush.xpose.msra.mxu0 %v69_v35  ;;  %580 = vmatpush.xpose.msra.mxu1 %v69_v35 }
  0x2d   :  { %584 = vmatpush.xpose.msra.mxu2 %v68_v37  ;;  %585 = vmatpush.xpose.msra.mxu3 %v68_v37 }
  0x2e   :  { %179 = vmatpush.xpose.msra.mxu0 %v68_v37  ;;  %583 = vmatpush.xpose.msra.mxu1 %v68_v37 }
  0x2f   :  { %152 = vadd.xlane.f32.xlu2 %v130_v31  ;;  %150 = vadd.xlane.f32.xlu1 %v129_v33 }
  0x30   :  { %148 = vadd.xlane.f32.xlu0 %v128_v30 }
  0x31   :  { %587 = vmatpush.xpose.msra.mxu2 %v67_v36  ;;  %588 = vmatpush.xpose.msra.mxu3 %v67_v36 }
  0x32   :  { %180 = vmatpush.xpose.msra.mxu0 %v67_v36  ;;  %586 = vmatpush.xpose.msra.mxu1 %v67_v36 }
  0x35   :  { %590 = vmatpush.xpose.msra.mxu2 %v66_v28  ;;  %591 = vmatpush.xpose.msra.mxu3 %v66_v28 }
  0x36   :  { %181 = vmatpush.xpose.msra.mxu0 %v66_v28  ;;  %589 = vmatpush.xpose.msra.mxu1 %v66_v28 }
  0x37   :  { %158 = vadd.xlane.f32.xlu2 %v133_v39  ;;  %156 = vadd.xlane.f32.xlu1 %v132_v41 }
  0x38   :  { %154 = vadd.xlane.f32.xlu0 %v131_v40 }
  0x39   :  { %593 = vmatpush.xpose.msra.mxu2 %v65_v29  ;;  %594 = vmatpush.xpose.msra.mxu3 %v65_v29 }
  0x3a   :  { %182 = vmatpush.xpose.msra.mxu0 %v65_v29  ;;  %592 = vmatpush.xpose.msra.mxu1 %v65_v29 }
  0x3d   :  { %596 = vmatpush.xpose.msra.mxu2 %v819_v27  ;;  %597 = vmatpush.xpose.msra.mxu3 %v819_v27 }
  0x3e   :  { %183 = vmatpush.xpose.msra.mxu0 %v819_v27  ;;  %595 = vmatpush.xpose.msra.mxu1 %v819_v27 }
  0x3f   :  { %164 = vadd.xlane.f32.xlu2 %v136_v42  ;;  %162 = vadd.xlane.f32.xlu1 %v135_v44 }
  0x40   :  { %160 = vadd.xlane.f32.xlu0 %v134_v43 }
  0x41   :  { %599 = vmatpush.xpose.msra.mxu2 %v797_v20  ;;  %600 = vmatpush.xpose.msra.mxu3 %v797_v20 }
  0x42   :  { %184 = vmatpush.xpose.msra.mxu0 %v797_v20  ;;  %598 = vmatpush.xpose.msra.mxu1 %v797_v20 }
  0x45   :  { %602 = vmatpush.xpose.msra.mxu2 %v800_v21  ;;  %603 = vmatpush.xpose.msra.mxu3 %v800_v21 }
  0x46   :  { %185 = vmatpush.xpose.msra.mxu0 %v800_v21  ;;  %601 = vmatpush.xpose.msra.mxu1 %v800_v21 }
  0x47   :  { %170 = vadd.xlane.f32.xlu2 %v139_v45  ;;  %168 = vadd.xlane.f32.xlu1 %v138_v51 }
  0x48   :  { %166 = vadd.xlane.f32.xlu0 %v137_v50 }
  0x49   :  { %605 = vmatpush.xpose.msra.mxu2 %v795_v19  ;;  %606 = vmatpush.xpose.msra.mxu3 %v795_v19 }
  0x4a   :  { %186 = vmatpush.xpose.msra.mxu0 %v795_v19  ;;  %604 = vmatpush.xpose.msra.mxu1 %v795_v19 }
  0x4d   :  { %608 = vmatpush.xpose.msra.mxu2 %v781_v12  ;;  %609 = vmatpush.xpose.msra.mxu3 %v781_v12 }
  0x4e   :  { %187 = vmatpush.xpose.msra.mxu0 %v781_v12  ;;  %607 = vmatpush.xpose.msra.mxu1 %v781_v12 }
  0x4f   :  { %112 = vadd.xlane.f32.xlu2 %v86_v47  ;;  %110 = vadd.xlane.f32.xlu1 %v85_v59 }
  0x50   :  { %212 = vmatmul.f32.vlgmr.msra.gmra.mxu2 %v52_v52  ;;  %224 = vmatmul.f32.vlgmr.msra.gmra.mxu3 %v56_v53 }
  0x51   :  { %188 = vmatmul.f32.vlgmr.msra.gmra.mxu0 %v759_v1  ;;  %200 = vmatmul.f32.vlgmr.msra.gmra.mxu1 %v757_v0  ;;  %v88_v1 = vmul.f32 %v56_v53, %v56_v53 }
  0x52   :  { %108 = vadd.xlane.f32.xlu0 %v84_v60 }
  0x57   :  { %118 = vadd.xlane.f32.xlu2 %v89_v49  ;;  %116 = vadd.xlane.f32.xlu1 %v88_v1 }
  0x58   :  { %215 = vmatmul.f32.gmra.mxu2 %v53_v54  ;;  %227 = vmatmul.f32.gmra.mxu3 %v57_v48 }
  0x59   :  { %191 = vmatmul.f32.gmra.mxu0 %v771_v7  ;;  %203 = vmatmul.f32.gmra.mxu1 %v769_v6  ;;  %v91_v6 = vmul.f32 %v59_v62, %v59_v62  ;;  %v90_v7 = vmul.f32 %v58_v55, %v58_v55 }
  0x5a   :  { %114 = vadd.xlane.f32.xlu0 %v87_v2 }
  0x5f   :  { %122 = vadd.xlane.f32.xlu1 %v91_v6 }
  0x60   :  { %218 = vmatmul.f32.gmra.mxu2 %v54_v46  ;;  %230 = vmatmul.f32.gmra.mxu3 %v58_v55 }
  0x61   :  { %194 = vmatmul.f32.gmra.mxu0 %v765_v4  ;;  %206 = vmatmul.f32.gmra.mxu1 %v783_v13 }
  0x62   :  { %120 = vadd.xlane.f32.xlu0 %v90_v7 }
  0x68   :  { %221 = vmatmul.f32.gmra.mxu2 %v55_v61  ;;  %233 = vmatmul.f32.gmra.mxu3 %v59_v62 }
  0x69   :  { %197 = vmatmul.f32.gmra.mxu0 %v773_v8  ;;  %209 = vmatmul.f32.gmra.mxu1 %v785_v14 }
  0x82   :  { %v861_v56 = vpop.xlane.xlu2 %100  ;;  %v865_v58 = vpop.xlane.xlu1 %96 }
  0x83   :  { %v863_v57 = vpop.xlane.xlu0 %92 }
  0x8a   :  { %v867_v63 = vpop.xlane.xlu2 %102  ;;  %v871_v3 = vpop.xlane.xlu1 %98 }
  0x8b   :  { %v869_v0 = vpop.xlane.xlu0 %94 }
  0x92   :  { %v141_v4 = vpop.xlane.xlu2 %140  ;;  %v107_v8 = vpop.xlane.xlu1 %106 }
  0x93   :  { %v873_v5 = vpop.xlane.xlu0 %104  ;;  %237 = vxpose.xlu2.b32.start [1/16] (narrow) %v141_v4, 8 }
  0x9a   :  { %v145_v10 = vpop.xlane.xlu1 %144  ;;  %v147_v11 = vpop.xlane.xlu2 %146 }
  0x9b   :  { %v143_v9 = vpop.xlane.xlu0 %142 }
  0x9c   :  { %238 = vxpose.xlu2.b32.cont [2/16] (narrow) %v143_v9, 8 }
  0xa2   :  { %v151_v13 = vpop.xlane.xlu1 %150  ;;  %v153_v14 = vpop.xlane.xlu2 %152 }
  0xa3   :  { %v149_v12 = vpop.xlane.xlu0 %148 }
  0xa4   :  { %239 = vxpose.xlu2.b32.cont [3/16] (narrow) %v145_v10, 8 }
  0xaa   :  { %v157_v16 = vpop.xlane.xlu1 %156  ;;  %v159_v17 = vpop.xlane.xlu2 %158 }
  0xab   :  { %v155_v15 = vpop.xlane.xlu0 %154 }
  0xac   :  { %240 = vxpose.xlu2.b32.cont [4/16] (narrow) %v147_v11, 8 }
  0xb2   :  { %v163_v19 = vpop.xlane.xlu1 %162  ;;  %v165_v20 = vpop.xlane.xlu2 %164 }
  0xb3   :  { %v161_v18 = vpop.xlane.xlu0 %160 }
  0xb4   :  { %241 = vxpose.xlu2.b32.cont [5/16] (narrow) %v149_v12, 8 }
  0xba   :  { %v169_v22 = vpop.xlane.xlu1 %168  ;;  %v171_v23 = vpop.xlane.xlu2 %170 }
  0xbb   :  { %v167_v21 = vpop.xlane.xlu0 %166 }
  0xbc   :  { %242 = vxpose.xlu2.b32.cont [6/16] (narrow) %v151_v13, 8 }
  0xc2   :  { %v111_v32 = vpop.xlane.xlu1 %110  ;;  %v875_v34 = vpop.xlane.xlu2 %112 }
  0xc4   :  { %243 = vxpose.xlu2.b32.cont [7/16] (narrow) %v153_v14, 8 }
  0xc5   :  { %v109_v33 = vpop.xlane.xlu0 %108 }
  0xca   :  { %v877_v39 = vpop.xlane.xlu1 %116  ;;  %v879_v41 = vpop.xlane.xlu2 %118 }
  0xcc   :  { %244 = vxpose.xlu2.b32.cont [8/16] (narrow) %v155_v15, 8 }
  0xcd   :  { %v115_v40 = vpop.xlane.xlu0 %114 }
  0xce   :  { %v201_v24 = vpop.f32.mrf.mxu1  ;;  %v189_v26 = vpop.f32.mrf.mxu0 }
  0xcf   :  { %v900_v13 = vmul.f32 2.0, %v201_v24 }
  0xd2   :  { %v123_v48 = vpop.xlane.xlu1 %122 }
  0xd3   :  { %v213_v25 = vpop.f32.mrf.mxu2  ;;  %v225_v27 = vpop.f32.mrf.mxu3 }
  0xd4   :  { %245 = vxpose.xlu2.b32.cont [9/16] (narrow) %v157_v16, 8  ;;  %v903_v14 = vmul.f32 2.0, %v213_v25 }
  0xd5   :  { %v121_v53 = vpop.xlane.xlu0 %120 }
  0xd6   :  { %v204_v28 = vpop.f32.mrf.mxu1  ;;  %v192_v31 = vpop.f32.mrf.mxu0 }
  0xd7   :  { %v905_v15 = vmul.f32 2.0, %v204_v28  ;;  %v907_v16 = vmul.f32 2.0, %v192_v31 }
  0xdb   :  { %v216_v29 = vpop.f32.mrf.mxu2  ;;  %v228_v30 = vpop.f32.mrf.mxu3 }
  0xdc   :  { %246 = vxpose.xlu2.b32.cont [10/16] (narrow) %v159_v17, 8  ;;  %v910_v17 = vmul.f32 2.0, %v225_v27 }
  0xde   :  { %v207_v35 = vpop.f32.mrf.mxu1  ;;  %v195_v38 = vpop.f32.mrf.mxu0 }
  0xe3   :  { %v219_v36 = vpop.f32.mrf.mxu2  ;;  %v231_v37 = vpop.f32.mrf.mxu3 }
  0xe4   :  { %247 = vxpose.xlu2.b32.cont [11/16] (narrow) %v161_v18, 8  ;;  %v300_v61 = vmul.f32 2.0, %v231_v37  ;;  %v912_v18 = vmul.f32 2.0, %v207_v35 }
  0xe6   :  { %v210_v42 = vpop.f32.mrf.mxu1  ;;  %v198_v45 = vpop.f32.mrf.mxu0 }
  0xe7   :  { %v293_v47 = vmul.f32 2.0, %v210_v42  ;;  %v289_v52 = vmul.f32 2.0, %v198_v45 }
  0xeb   :  { %v222_v43 = vpop.f32.mrf.mxu2  ;;  %v234_v44 = vpop.f32.mrf.mxu3 }
  0xec   :  { %248 = vxpose.xlu2.b32.cont [12/16] (narrow) %v163_v19, 8  ;;  %v297_v50 = vmul.f32 2.0, %v222_v43  ;;  %v301_v51 = vmul.f32 2.0, %v234_v44 }
  0xf4   :  { %249 = vxpose.xlu2.b32.cont [13/16] (narrow) %v165_v20, 8  ;;  %v917_v20 = vmul.f32 2.0, %v216_v29 }
  0xfc   :  { %250 = vxpose.xlu2.b32.cont [14/16] (narrow) %v167_v21, 8  ;;  %v919_v21 = vmul.f32 2.0, %v228_v30 }
 0x104   :  { %251 = vxpose.xlu2.b32.cont [15/16] (narrow) %v169_v22, 8  ;;  %v921_v22 = vmul.f32 2.0, %v195_v38 }
 0x10c   :  { %252 = vxpose.xlu2.b32.end [16/16] (narrow) %v171_v23, 8  ;;  %v924_v23 = vmul.f32 2.0, %v219_v36 }
 0x12d   :  { %v253_v46 = vpop.trf.xlu2 }
 0x12e   :  { %v881_v49 = vperm.slane %v253_v46, 0 }
 0x130   :  { %v277_v54 = vadd.f32 %v881_v49, %v107_v8  ;;  %v281_v55 = vadd.f32 %v881_v49, %v115_v40  ;;  %v285_v59 = vadd.f32 %v881_v49, %v123_v48  ;;  %v273_v60 = vadd.f32 %v881_v49, %v871_v3 }
 0x131   :  { %v284_v62 = vadd.f32 %v881_v49, %v121_v53  ;;  %v286_v3 = vmul.f32 2.0, %v189_v26  ;;  %v270_v19 = vadd.f32 %v881_v49, %v863_v57  ;;  %v271_v24 = vadd.f32 %v881_v49, %v869_v0 }
 0x132   :  { %v309_v1 = vsub.f32 %v277_v54, %v293_v47  ;;  %v313_v2 = vsub.f32 %v281_v55, %v297_v50  ;;  %v317_v4 = vsub.f32 %v285_v59, %v301_v51  ;;  %v305_v6 = vsub.f32 %v273_v60, %v289_v52 }
 0x133   :  { %v316_v7 = vsub.f32 %v284_v62, %v300_v61  ;;  %v930_v25 = vadd.f32 %v881_v49, %v865_v58  ;;  %v934_v57 = vadd.f32 %v881_v49, %v861_v56  ;;  %v938_v27 = vadd.f32 %v881_v49, %v867_v63 }
 0x134   :  { %v889_v9 = vmax.f32 %v309_v1, 0.0  ;;  %v891_v10 = vmax.f32 %v313_v2, 0.0  ;;  %v893_v8 = vmax.f32 %v317_v4, 0.0  ;;  %v895_v11 = vmax.f32 %v305_v6, 0.0 }
 0x135   :  { %v898_v12 = vmax.f32 %v316_v7, 0.0  ;;  %v942_v28 = vadd.f32 %v881_v49, %v873_v5  ;;  %v945_v29 = vadd.f32 %v881_v49, %v109_v33  ;;  %v948_v0 = vadd.f32 %v881_v49, %v111_v32 }
 0x136   :  { %615 = vrsqrt.f32 %v889_v9  ;;  %v428_v56 = vand.u32 2147483648, %v889_v9  ;;  %v954_v31 = vadd.f32 %v881_v49, %v875_v34  ;;  %v302_v63 = vsub.f32 %v270_v19, %v286_v3 }
 0x137   :  { %617 = vrsqrt.f32 %v891_v10  ;;  %v476_v36 = vand.u32 2147483648, %v891_v10  ;;  %v524_v33 = vand.u32 2147483648, %v893_v8  ;;  %v380_v32 = vand.u32 2147483648, %v895_v11 }
 0x138   :  { %619 = vrsqrt.f32 %v893_v8  ;;  %v512_v42 = vand.u32 2147483648, %v898_v12  ;;  %v964_v34 = vadd.f32 %v881_v49, %v877_v39  ;;  %vm425_vm0 = vcmp.eq.f32.partialorder %v889_v9, inf }
 0x139   :  { %621 = vrsqrt.f32 %v895_v11  ;;  %v970_v46 = vadd.f32 %v881_v49, %v879_v41  ;;  %v303_v47 = vsub.f32 %v271_v24, %v907_v16  ;;  %vm427_vm1 = vcmp.eq.f32.partialorder %v889_v9, 0.0 }
 0x13a   :  { %623 = vrsqrt.f32 %v898_v12  ;;  %vm473_vm2 = vcmp.eq.f32.partialorder %v891_v10, inf  ;;  %v976_v51 = vmax.f32 %v302_v63, 0.0  ;;  %vm475_vm3 = vcmp.eq.f32.partialorder %v891_v10, 0.0 }
 0x13b   :  { %vm521_vm4 = vcmp.eq.f32.partialorder %v893_v8, inf  ;;  %v304_v41 = vsub.f32 %v930_v25, %v921_v22  ;;  %v306_v49 = vsub.f32 %v934_v57, %v900_v13  ;;  %vm523_vm5 = vcmp.eq.f32.partialorder %v893_v8, 0.0 }
 0x13c   :  { %v616_v26 = vpop.eup %615  ;;  %vm377_vm6 = vcmp.eq.f32.partialorder %v895_v11, inf  ;;  %v307_v60 = vsub.f32 %v938_v27, %v905_v15  ;;  %vm379_vm7 = vcmp.eq.f32.partialorder %v895_v11, 0.0  ;;  %vm509_vm8 = vcmp.eq.f32.partialorder %v898_v12, inf }
 0x13d   :  { %v618_v58 = vpop.eup %617  ;;  %v419_v30 = vmul.f32 %v616_v26, %v889_v9  ;;  %v308_v1 = vsub.f32 %v942_v28, %v912_v18  ;;  %v992_v2 = vmax.f32 %v303_v47, 0.0  ;;  %vm511_vm9 = vcmp.eq.f32.partialorder %v898_v12, 0.0 }
 0x13e   :  { %v620_v35 = vpop.eup %619  ;;  %v467_v5 = vmul.f32 %v618_v58, %v891_v10  ;;  %625 = vrsqrt.f32 %v976_v51  ;;  %v310_v15 = vsub.f32 %v945_v29, %v903_v14  ;;  %v311_v16 = vsub.f32 %v948_v0, %v917_v20 }
 0x13f   :  { %v622_v37 = vpop.eup %621  ;;  %v420_v38 = vmul.f32 %v616_v26, %v419_v30  ;;  %v515_v40 = vmul.f32 %v620_v35, %v893_v8  ;;  %v1001_v24 = vmax.f32 %v304_v41, 0.0  ;;  %627 = vrsqrt.f32 %v992_v2 }
 0x140   :  { %v624_v43 = vpop.eup %623  ;;  %v468_v44 = vmul.f32 %v618_v58, %v467_v5  ;;  %v371_v45 = vmul.f32 %v622_v37, %v895_v11  ;;  %v1011_v28 = vmax.f32 %v306_v49, 0.0  ;;  %vm341_vm10 = vcmp.eq.f32.partialorder %v976_v51, inf }
 0x141   :  { %v421_v48 = vmul.f32 0.5, %v420_v38  ;;  %v516_v50 = vmul.f32 %v620_v35, %v515_v40  ;;  %v503_v39 = vmul.f32 %v624_v43, %v898_v12  ;;  %629 = vrsqrt.f32 %v1001_v24 }
 0x142   :  { %v469_v52 = vmul.f32 0.5, %v468_v44  ;;  %v372_v53 = vmul.f32 %v622_v37, %v371_v45  ;;  %v1057_v40 = vmax.f32 %v310_v15, 0.0  ;;  %631 = vrsqrt.f32 %v1011_v28 }
 0x143   :  { %v422_v54 = vsub.f32 1.5, %v421_v48  ;;  %v517_v55 = vmul.f32 0.5, %v516_v50  ;;  %v504_v59 = vmul.f32 %v624_v43, %v503_v39  ;;  %vm343_vm11 = vcmp.eq.f32.partialorder %v976_v51, 0.0 }
 0x144   :  { %v470_v61 = vsub.f32 1.5, %v469_v52  ;;  %v373_v62 = vmul.f32 0.5, %v372_v53  ;;  %v626_v30 = vpop.eup %625  ;;  %v344_v48 = vand.u32 2147483648, %v976_v51  ;;  %vm353_vm12 = vcmp.eq.f32.partialorder %v992_v2, inf }
 0x145   :  { %v423_v4 = vmul.f32 %v616_v26, %v422_v54  ;;  %v518_v6 = vsub.f32 1.5, %v517_v55  ;;  %v505_v7 = vmul.f32 0.5, %v504_v59  ;;  %v312_v26 = vsub.f32 %v954_v31, %v924_v23  ;;  %v628_v38 = vpop.eup %627 }
 0x146   :  { %v471_v3 = vmul.f32 %v618_v58, %v470_v61  ;;  %v374_v13 = vsub.f32 1.5, %v373_v62  ;;  %v1021_v58 = vmax.f32 %v307_v60, 0.0  ;;  %v335_v5 = vmul.f32 %v626_v30, %v976_v51 }
 0x147   :  { %v424_v19 = vmul.f32 %v423_v4, %v889_v9  ;;  %v519_v18 = vmul.f32 %v620_v35, %v518_v6  ;;  %v506_v22 = vsub.f32 1.5, %v505_v7  ;;  %v630_v44 = vpop.eup %629  ;;  %vm355_vm13 = vcmp.eq.f32.partialorder %v992_v2, 0.0 }
 0x148   :  { %v472_v25 = vmul.f32 %v471_v3, %v891_v10  ;;  %v375_v57 = vmul.f32 %v622_v37, %v374_v13  ;;  %v1051_v37 = vmax.f32 %v308_v1, 0.0  ;;  %633 = vrsqrt.f32 %v1021_v58  ;;  %v632_v39 = vpop.eup %631 }
 0x149   :  { %v426_v14 = vsel %vm425_vm0, %v889_v9, %v424_v19  ;;  %v520_v20 = vmul.f32 %v519_v18, %v893_v8  ;;  %v507_v27 = vmul.f32 %v624_v43, %v506_v22  ;;  %v359_v47 = vmul.f32 %v630_v44, %v1001_v24 }
 0x14a   :  { %v429_v29 = vsel %vm427_vm1, %v428_v56, %v426_v14  ;;  %v474_v23 = vsel %vm473_vm2, %v891_v10, %v472_v25  ;;  %v376_v0 = vmul.f32 %v375_v57, %v895_v11  ;;  %v314_v10 = vsub.f32 %v964_v34, %v910_v17 }
 0x14b   :  { %533 = vst [vmem:[#allocation7 + $0x38] sm:$0xff] %v429_v29  ;;  %v477_v31 = vsel %vm475_vm3, %v476_v36, %v474_v23  ;;  %v522_v9 = vsel %vm521_vm4, %v893_v8, %v520_v20  ;;  %v508_v56 = vmul.f32 %v507_v27, %v898_v12  ;;  %v1064_v34 = vmax.f32 %v312_v26, 0.0 }
 0x14c   :  { %537 = vst [vmem:[#allocation7 + $0x58] sm:$0xff] %v477_v31  ;;  %v525_v63 = vsel %vm523_vm5, %v524_v33, %v522_v9  ;;  %v378_v35 = vsel %vm377_vm6, %v895_v11, %v376_v0  ;;  %v315_v33 = vsub.f32 %v970_v46, %v919_v21  ;;  %v336_v11 = vmul.f32 %v626_v30, %v335_v5 }
 0x14d   :  { %541 = vst [vmem:[#allocation7 + $0x78] sm:$0xff] %v525_v63  ;;  %v381_v36 = vsel %vm379_vm7, %v380_v32, %v378_v35  ;;  %v510_v8 = vsel %vm509_vm8, %v898_v12, %v508_v56  ;;  %v347_v32 = vmul.f32 %v628_v38, %v992_v2  ;;  %v1062_v21 = vmax.f32 %v311_v16, 0.0 }
 0x14e   :  { %529 = vst [vmem:[#allocation7 + $0x18] sm:$0xff] %v381_v36  ;;  %v513_v17 = vsel %vm511_vm9, %v512_v42, %v510_v8  ;;  %v337_v43 = vmul.f32 0.5, %v336_v11  ;;  %v1066_v45 = vmax.f32 %v314_v10, 0.0  ;;  %v1068_v12 = vmax.f32 %v315_v33, 0.0  ;;  %v634_v41 = vpop.eup %633 }
 0x14f   :  { %540 = vst [vmem:[#allocation7 + $0x70] sm:$0xff] %v513_v17  ;;  %v348_v42 = vmul.f32 %v628_v38, %v347_v32  ;;  %635 = vrsqrt.f32 %v1051_v37  ;;  %v360_v53 = vmul.f32 %v630_v44, %v359_v47  ;;  %v356_v54 = vand.u32 2147483648, %v992_v2 }
 0x150   :  { %v338_v46 = vsub.f32 1.5, %v337_v43  ;;  %637 = vrsqrt.f32 %v1057_v40  ;;  %vm365_vm14 = vcmp.eq.f32.partialorder %v1001_v24, inf  ;;  %v383_v55 = vmul.f32 %v632_v39, %v1011_v28 }
 0x151   :  { %v349_v50 = vmul.f32 0.5, %v348_v42  ;;  %639 = vrsqrt.f32 %v1062_v21  ;;  %v361_v60 = vmul.f32 0.5, %v360_v53  ;;  %vm367_vm15 = vcmp.eq.f32.partialorder %v1001_v24, 0.0 }
 0x152   :  { %v339_v52 = vmul.f32 %v626_v30, %v338_v46  ;;  %v395_v61 = vmul.f32 %v634_v41, %v1021_v58  ;;  %641 = vrsqrt.f32 %v1064_v34  ;;  %v368_v4 = vand.u32 2147483648, %v1001_v24 }
 0x153   :  { %v350_v49 = vsub.f32 1.5, %v349_v50  ;;  %v384_v6 = vmul.f32 %v632_v39, %v383_v55  ;;  %v392_v7 = vand.u32 2147483648, %v1011_v28  ;;  %v362_v15 = vsub.f32 1.5, %v361_v60 }
 0x154   :  { %v340_v59 = vmul.f32 %v339_v52, %v976_v51  ;;  %vm389_vm0 = vcmp.eq.f32.partialorder %v1011_v28, inf  ;;  %v396_v16 = vmul.f32 %v634_v41, %v395_v61  ;;  %vm391_vm1 = vcmp.eq.f32.partialorder %v1011_v28, 0.0 }
 0x155   :  { %v636_v62 = vpop.eup %635  ;;  %v351_v1 = vmul.f32 %v628_v38, %v350_v49  ;;  %v385_v25 = vmul.f32 0.5, %v384_v6  ;;  %vm401_vm2 = vcmp.eq.f32.partialorder %v1021_v58, inf  ;;  %v363_v14 = vmul.f32 %v630_v44, %v362_v15 }
 0x156   :  { %v638_v3 = vpop.eup %637  ;;  %v342_v13 = vsel %vm341_vm10, %v976_v51, %v340_v59  ;;  %v407_v19 = vmul.f32 %v636_v62, %v1051_v37  ;;  %v397_v20 = vmul.f32 0.5, %v396_v16  ;;  %vm403_vm3 = vcmp.eq.f32.partialorder %v1021_v58, 0.0 }
 0x157   :  { %v345_v18 = vsel %vm343_vm11, %v344_v48, %v342_v13  ;;  %v352_v22 = vmul.f32 %v351_v1, %v992_v2  ;;  %v431_v57 = vmul.f32 %v638_v3, %v1057_v40  ;;  %v640_v26 = vpop.eup %639  ;;  %v404_v27 = vand.u32 2147483648, %v1021_v58 }
 0x158   :  { %v408_v29 = vmul.f32 %v636_v62, %v407_v19  ;;  %526 = vst [vmem:[#allocation7] sm:$0xff] %v345_v18  ;;  %v386_v23 = vsub.f32 1.5, %v385_v25  ;;  %vm413_vm4 = vcmp.eq.f32.partialorder %v1051_v37, inf  ;;  %v443_v30 = vmul.f32 %v640_v26, %v1062_v21  ;;  %v642_v31 = vpop.eup %641 }
 0x159   :  { %v354_v51 = vsel %vm353_vm12, %v992_v2, %v352_v22  ;;  %v432_v0 = vmul.f32 %v638_v3, %v431_v57  ;;  %v364_v56 = vmul.f32 %v363_v14, %v1001_v24  ;;  %v398_v63 = vsub.f32 1.5, %v397_v20 }
 0x15a   :  { %v357_v9 = vsel %vm355_vm13, %v356_v54, %v354_v51  ;;  %v409_v35 = vmul.f32 0.5, %v408_v29  ;;  %vm415_vm5 = vcmp.eq.f32.partialorder %v1051_v37, 0.0  ;;  %v387_v10 = vmul.f32 %v632_v39, %v386_v23 }
 0x15b   :  { %v433_v5 = vmul.f32 0.5, %v432_v0  ;;  %v444_v36 = vmul.f32 %v640_v26, %v443_v30  ;;  %v455_v8 = vmul.f32 %v642_v31, %v1064_v34  ;;  %527 = vst [vmem:[#allocation7 + $0x8] sm:$0xff] %v357_v9  ;;  %v366_v33 = vsel %vm365_vm14, %v1001_v24, %v364_v56 }
 0x15c   :  { %v399_v38 = vmul.f32 %v634_v41, %v398_v63  ;;  %v410_v17 = vsub.f32 1.5, %v409_v35  ;;  %643 = vrsqrt.f32 %v1066_v45  ;;  %v369_v2 = vsel %vm367_vm15, %v368_v4, %v366_v33 }
 0x15d   :  { %v388_v11 = vmul.f32 %v387_v10, %v1011_v28  ;;  %v434_v32 = vsub.f32 1.5, %v433_v5  ;;  %v445_v43 = vmul.f32 0.5, %v444_v36  ;;  %v416_v46 = vand.u32 2147483648, %v1051_v37  ;;  %528 = vst [vmem:[#allocation7 + $0x10] sm:$0xff] %v369_v2 }
 0x15e   :  { %v400_v44 = vmul.f32 %v399_v38, %v1021_v58  ;;  %v411_v42 = vmul.f32 %v636_v62, %v410_v17  ;;  %v456_v47 = vmul.f32 %v642_v31, %v455_v8  ;;  %vm437_vm6 = vcmp.eq.f32.partialorder %v1057_v40, inf }
 0x15f   :  { %v390_v48 = vsel %vm389_vm0, %v1011_v28, %v388_v11  ;;  %v435_v50 = vmul.f32 %v638_v3, %v434_v32  ;;  %v446_v24 = vsub.f32 1.5, %v445_v43  ;;  %vm439_vm7 = vcmp.eq.f32.partialorder %v1057_v40, 0.0 }
 0x160   :  { %v393_v39 = vsel %vm391_vm1, %v392_v7, %v390_v48  ;;  %v402_v52 = vsel %vm401_vm2, %v1021_v58, %v400_v44  ;;  %v412_v53 = vmul.f32 %v411_v42, %v1051_v37  ;;  %v457_v41 = vmul.f32 0.5, %v456_v47 }
 0x161   :  { %v405_v49 = vsel %vm403_vm3, %v404_v27, %v402_v52  ;;  %v436_v54 = vmul.f32 %v435_v50, %v1057_v40  ;;  %v447_v55 = vmul.f32 %v640_v26, %v446_v24  ;;  %530 = vst [vmem:[#allocation7 + $0x20] sm:$0xff] %v393_v39  ;;  %v440_v60 = vand.u32 2147483648, %v1057_v40 }
 0x162   :  { %v644_v59 = vpop.eup %643  ;;  %v414_v28 = vsel %vm413_vm4, %v1051_v37, %v412_v53  ;;  %v458_v61 = vsub.f32 1.5, %v457_v41  ;;  %645 = vrsqrt.f32 %v1068_v12  ;;  %531 = vst [vmem:[#allocation7 + $0x28] sm:$0xff] %v405_v49  ;;  %vm449_vm8 = vcmp.eq.f32.partialorder %v1062_v21, inf }
 0x163   :  { %v417_v58 = vsel %vm415_vm5, %v416_v46, %v414_v28  ;;  %v438_v62 = vsel %vm437_vm6, %v1057_v40, %v436_v54  ;;  %v448_v1 = vmul.f32 %v447_v55, %v1062_v21  ;;  %v479_v4 = vmul.f32 %v644_v59, %v1066_v45 }
 0x164   :  { %v441_v6 = vsel %vm439_vm7, %v440_v60, %v438_v62  ;;  %v452_v7 = vand.u32 2147483648, %v1062_v21  ;;  %v459_v3 = vmul.f32 %v642_v31, %v458_v61  ;;  %532 = vst [vmem:[#allocation7 + $0x30] sm:$0xff] %v417_v58  ;;  %vm451_vm9 = vcmp.eq.f32.partialorder %v1062_v21, 0.0 }
 0x165   :  { %v450_v13 = vsel %vm449_vm8, %v1062_v21, %v448_v1  ;;  %v480_v37 = vmul.f32 %v644_v59, %v479_v4  ;;  %534 = vst [vmem:[#allocation7 + $0x40] sm:$0xff] %v441_v6  ;;  %vm461_vm10 = vcmp.eq.f32.partialorder %v1064_v34, inf  ;;  %v464_v16 = vand.u32 2147483648, %v1064_v34 }
 0x166   :  { %v453_v15 = vsel %vm451_vm9, %v452_v7, %v450_v13  ;;  %v460_v40 = vmul.f32 %v459_v3, %v1064_v34  ;;  %vm463_vm11 = vcmp.eq.f32.partialorder %v1064_v34, 0.0  ;;  %vm485_vm12 = vcmp.eq.f32.partialorder %v1066_v45, inf }
 0x167   :  { %v481_v19 = vmul.f32 0.5, %v480_v37  ;;  %535 = vst [vmem:[#allocation7 + $0x48] sm:$0xff] %v453_v15  ;;  %v488_v29 = vand.u32 2147483648, %v1066_v45  ;;  %vm487_vm13 = vcmp.eq.f32.partialorder %v1066_v45, 0.0  ;;  %vm497_vm14 = vcmp.eq.f32.partialorder %v1068_v12, inf }
 0x168   :  { %v646_v18 = vpop.eup %645  ;;  %v462_v22 = vsel %vm461_vm10, %v1064_v34, %v460_v40  ;;  %v500_v31 = vand.u32 2147483648, %v1068_v12  ;;  %vm499_vm15 = vcmp.eq.f32.partialorder %v1068_v12, 0.0 }
 0x169   :  { %v465_v25 = vsel %vm463_vm11, %v464_v16, %v462_v22  ;;  %v482_v57 = vsub.f32 1.5, %v481_v19  ;;  %v491_v21 = vmul.f32 %v646_v18, %v1068_v12 }
 0x16a   :  { %536 = vst [vmem:[#allocation7 + $0x50] sm:$0xff] %v465_v25 }
 0x16b   :  { %v483_v26 = vmul.f32 %v644_v59, %v482_v57  ;;  %v492_v14 = vmul.f32 %v646_v18, %v491_v21 }
 0x16d   :  { %v484_v20 = vmul.f32 %v483_v26, %v1066_v45  ;;  %v493_v27 = vmul.f32 0.5, %v492_v14 }
 0x16f   :  { %v486_v51 = vsel %vm485_vm12, %v1066_v45, %v484_v20  ;;  %v494_v23 = vsub.f32 1.5, %v493_v27 }
 0x170   :  { %v489_v34 = vsel %vm487_vm13, %v488_v29, %v486_v51 }
 0x171   :  { %v495_v0 = vmul.f32 %v646_v18, %v494_v23  ;;  %538 = vst [vmem:[#allocation7 + $0x60] sm:$0xff] %v489_v34 }
 0x173   :  { %v496_v30 = vmul.f32 %v495_v0, %v1068_v12 }
 0x175   :  { %v498_v9 = vsel %vm497_vm14, %v1068_v12, %v496_v30 }
 0x176   :  { %v501_v45 = vsel %vm499_vm15, %v500_v31, %v498_v9 }
 0x177   :  { %539 = vst [vmem:[#allocation7 + $0x68] sm:$0xff] %v501_v45 }
 0x178   :  { %554 = dma.vmem_to_hbm [thread:$0]  %s547_s1, 2048, %s549_s23, [#allocation4], %s726_s17, %s726_s17, %s727_s18  }
 0x179   :  { %723 = dma.done.wait [#allocation4], 2048  }
 0x17a   :  { %724 = vsyncadd [#allocation4], 4294965248 }
 0x17b   :  { %559 = vsyncpa [#allocation3], 1 }
 0x17c   :  { %560 = vsyncpa [#allocation6], 1 }
 0x17d   :  { %561 = vsyncpa [#allocation4], 1 }

</bundles_post_ra>
